<compile_context>
chip_gen: v7x
topology: tpu7x:2x2x1
jax: 0.10.0
libtpu: 0.0.40
codegen_flags: <defaults>
</compile_context>

<pallas_src>
import jax
import jax.numpy as jnp
from jax import lax
from jax.experimental import pallas as pl
from jax.experimental.pallas import tpu as pltpu


def _round_up(x, m):
    return ((x + m - 1) // m) * m


def _qconv_gemm_kernel(out_scale_ref, patches_ref, wcode_ref, b_ref, o_ref, acc_ref):
    """One (M-tile, OC-tile, K-tile) step of the quantized GEMM.

    out_scale_ref : (1,)             f32  SMEM scalar prefetch: w_scale / a_scale
    patches_ref   : (TM, TK)         bf16 activation integer codes (pre-quantized)
    wcode_ref     : (TK, TN)         bf16 weight integer codes (pre-quantized)
    b_ref         : (1, TN)          f32  bias (zero-padded)
    o_ref         : (TM, TN)         f32  output tile
    acc_ref       : (TM, TN) scratch f32  accumulator, resident across K steps
    """
    k = pl.program_id(2)

    @pl.when(k == 0)
    def _init():
        acc_ref[...] = jnp.zeros_like(acc_ref)

    # bf16 x bf16 -> f32 MXU matmul on exact integer codes.
    acc_ref[...] += jnp.dot(patches_ref[...], wcode_ref[...],
                            preferred_element_type=jnp.float32)

    @pl.when(k == pl.num_programs(2) - 1)
    def _finalize():
        o_ref[...] = acc_ref[...] * out_scale_ref[0] + b_ref[...]


def qconv_mere_forward(x, weight, bias, alpha, *, stride, padding, abit=8, wbit=8,
                       tile_m=None, tile_n=None, tile_k=None):
    """Forward pass of Qconv_MERE (bn=False, ActQ='PACT').

    x      : (N, C, H, W)    NCHW, float32
    weight : (OC, C, KH, KW) float32
    bias   : (OC,)           float32
    alpha  : scalar          PACT clip parameter
    Returns (N, OC, OH, OW) float32.
    """
    # bf16 represents integers exactly only up to 256 -> codes must be <= 8-bit.
    assert abit <= 8 and wbit <= 8, "bf16 integer-code path requires abit,wbit <= 8"

    N, C, H, W = x.shape
    OC, _, KH, KW = weight.shape

    # ---- generation-aware tile / VMEM defaults.
    try:
        kind = jax.devices()[0].device_kind.lower()
    except Exception:  # pragma: no cover - e.g. interpret mode
        kind = ""
    if tile_n is None:
        tile_n = 256 if ("v6" in kind or "v7" in kind) else 128  # v5e: 4x128^2 MXU
    if tile_m is None:
        tile_m = 512
    if tile_k is None:
        tile_k = 512
    vmem_cap = (40 << 20) if "v7" in kind else (64 << 20)

    # ---- PACT activation fake-quant, hoisted BEFORE im2col (done once per pixel).
    alpha_g = jnp.maximum(jnp.asarray(alpha, jnp.float32), 1e-8)  # PACT guard
    a_levels = jnp.float32(2 ** abit - 1)
    a_scale = a_levels / alpha_g
    # Exact integer codes 0 .. 2^abit-1, representable in bf16.
    x_code = jnp.round(jnp.clip(x.astype(jnp.float32), 0.0, alpha_g) * a_scale)
    x_code = x_code.astype(jnp.bfloat16)

    # ---- im2col glue directly to channel-last patches (feature ordering is
    # (C, KH, KW), matching the flattened PyTorch weight layout (OC, C*KH*KW)).
    # Conv zero-padding of codes is exact: a zero input quantizes to code 0.
    patches = lax.conv_general_dilated_patches(
        x_code,
        filter_shape=(KH, KW),
        window_strides=(stride, stride),
        padding=[(padding, padding), (padding, padding)],
        dimension_numbers=("NCHW", "OIHW", "NHWC"),
    )  # (N, OH, OW, C*KH*KW), bf16
    _, OH, OW, K = patches.shape
    M = N * OH * OW
    patches = patches.reshape(M, K)

    # ---- lane-dense padding + final tile sizes (tiles never exceed padded dims).
    K128 = _round_up(K, 128)
    tile_k = min(tile_k, K128)
    K_pad = _round_up(K128, tile_k)

    OC128 = _round_up(OC, 128)
    tile_n = min(tile_n, OC128)
    OC_pad = _round_up(OC128, tile_n)

    tile_m = min(tile_m, _round_up(M, 16))
    M_pad = _round_up(M, tile_m)

    patches = jnp.pad(patches, ((0, M_pad - M), (0, K_pad - K)))

    # ---- weight fake-quant hoisted out of the kernel (per-tensor symmetric).
    w_levels = jnp.float32(2 ** (wbit - 1) - 1)
    w_mat = weight.reshape(OC, K).T.astype(jnp.float32)             # (K, OC)
    w_scale = jnp.maximum(jnp.max(jnp.abs(w_mat)), 1e-8) / w_levels
    w_code = jnp.round(w_mat / w_scale).astype(jnp.bfloat16)        # exact +-127
    w_code = jnp.pad(w_code, ((0, K_pad - K), (0, OC_pad - OC)))    # zero pad = exact
    b_mat = jnp.pad(bias.astype(jnp.float32).reshape(1, OC),
                    ((0, 0), (0, OC_pad - OC)))

    out_scale = (w_scale / a_scale).reshape(1).astype(jnp.float32)

    grid_m = M_pad // tile_m
    grid_n = OC_pad // tile_n
    grid_k = K_pad // tile_k

    # Double-buffered blocks + accumulator + headroom, clamped under the cap.
    block_bytes = tile_m * tile_k * 2 + tile_k * tile_n * 2 + tile_m * tile_n * 4
    vmem_bytes = int(min(vmem_cap,
                         max(2 * block_bytes + tile_m * tile_n * 4 + (4 << 20),
                             16 << 20)))

    flops = 2 * M_pad * K_pad * OC_pad
    bytes_accessed = (grid_n * M_pad * K_pad * 2      # patches re-read per OC tile
                      + grid_m * K_pad * OC_pad * 2   # weights re-read per M tile
                      + M_pad * OC_pad * 4)           # output writeback

    out_flat = pl.pallas_call(
        _qconv_gemm_kernel,
        out_shape=jax.ShapeDtypeStruct((M_pad, OC_pad), jnp.float32),
        grid_spec=pltpu.PrefetchScalarGridSpec(
            num_scalar_prefetch=1,
            grid=(grid_m, grid_n, grid_k),
            in_specs=[
                pl.BlockSpec((tile_m, tile_k), lambda i, j, k, s: (i, k)),  # patches
                pl.BlockSpec((tile_k, tile_n), lambda i, j, k, s: (k, j)),  # w codes
                pl.BlockSpec((1, tile_n), lambda i, j, k, s: (0, j)),       # bias
            ],
            out_specs=pl.BlockSpec((tile_m, tile_n), lambda i, j, k, s: (i, j)),
            scratch_shapes=[pltpu.VMEM((tile_m, tile_n), jnp.float32)],
        ),
        compiler_params=pltpu.CompilerParams(
            dimension_semantics=("parallel", "parallel", "arbitrary"),
            vmem_limit_bytes=vmem_bytes),
        cost_estimate=pl.CostEstimate(flops=flops, transcendentals=0,
                                      bytes_accessed=bytes_accessed),
    )(out_scale, patches, w_code, b_mat)

    out = out_flat[:M, :OC].reshape(N, OH, OW, OC)
    # TODO(synk): this final transpose is only needed because the module contract
    # is NCHW; an NHWC end-to-end model would drop it (one HBM pass saved).
    return jnp.transpose(out, (0, 3, 1, 2))


def _reference(x, weight, bias, alpha, *, stride, padding, abit, wbit):
    """Pure-JAX reference for correctness checking."""
    a_levels = 2 ** abit - 1
    a_scale = a_levels / alpha
    x_q = jnp.round(jnp.clip(x, 0.0, alpha) * a_scale) / a_scale
    w_levels = 2 ** (wbit - 1) - 1
    w_scale = jnp.maximum(jnp.max(jnp.abs(weight)), 1e-8) / w_levels
    w_q = jnp.round(weight / w_scale) * w_scale
    out = lax.conv_general_dilated(
        x_q, w_q, window_strides=(stride, stride),
        padding=[(padding, padding), (padding, padding)],
        dimension_numbers=("NCHW", "OIHW", "NCHW"))
    return out + bias.reshape(1, -1, 1, 1)


if __name__ == "__main__":
    # Module hyperparameters (small, consistent with Qconv_MERE).
    N, C, H, W = 2, 4, 16, 16
    OC, KH, KW = 8, 3, 3
    stride, padding = 1, 1
    wbit, abit = 8, 8

    key = jax.random.PRNGKey(0)
    kx, kw, kb = jax.random.split(key, 3)
    x = jax.random.normal(kx, (N, C, H, W), dtype=jnp.float32)
    weight = 0.1 * jax.random.normal(kw, (OC, C, KH, KW), dtype=jnp.float32)
    bias = 0.01 * jax.random.normal(kb, (OC,), dtype=jnp.float32)
    alpha = 10.0  # deterministic PACT clip-parameter init (as in PACT paper)

    out = qconv_mere_forward(x, weight, bias, alpha,
                             stride=stride, padding=padding,
                             abit=abit, wbit=wbit)
    out = jax.block_until_ready(out)

    ref = _reference(x, weight, bias, alpha, stride=stride, padding=padding,
                     abit=abit, wbit=wbit)
    assert out.shape == (N, OC, H, W)
    assert jnp.max(jnp.abs(out - ref)) < 1e-3

    print("KERNEL_OK")
</pallas_src>

<mosaic_0001>
module attributes {stable_mosaic.version = 11 : i64} {
  func.func @_qconv_gemm_kernel(%arg0: i32, %arg1: i32, %arg2: i32, %arg3: memref<1xf32, #tpu.memory_space<smem>>, %arg4: memref<512x128xbf16, #tpu.memory_space<vmem>>, %arg5: memref<128x128xbf16, #tpu.memory_space<vmem>>, %arg6: memref<1x128xf32, #tpu.memory_space<vmem>>, %arg7: memref<512x128xf32, #tpu.memory_space<vmem>>, %arg8: memref<512x128xf32, #tpu.memory_space<vmem>>) attributes {dimension_semantics = [#tpu.dimension_semantics<parallel>, #tpu.dimension_semantics<parallel>, #tpu.dimension_semantics<arbitrary>], iteration_bounds = array<i64: 1, 1, 1>, scalar_prefetch = 1 : i64, scratch_operands = 1 : i64, tpu.core_type = #tpu.core_type<tc>, window_params = [{transform_indices = @transform_0, window_bounds = array<i64: 512, 128>}, {transform_indices = @transform_1, window_bounds = array<i64: 128, 128>}, {transform_indices = @transform_2, window_bounds = array<i64: 1, 128>}, {transform_indices = @transform_3, window_bounds = array<i64: 512, 128>}]} {
    %c0_i32 = arith.constant 0 : i32
    %0 = arith.cmpi eq, %arg2, %c0_i32 : i32
    %1 = arith.extui %0 : i1 to i32
    %c0_i32_0 = arith.constant 0 : i32
    %2 = arith.cmpi ne, %1, %c0_i32_0 : i32
    scf.if %2 {
      %cst_10 = arith.constant 0.000000e+00 : f32
      %12 = vector.broadcast %cst_10 : f32 to vector<512x128xf32>
      %c0_11 = arith.constant 0 : index
      %c0_12 = arith.constant 0 : index
      %13 = vector.load %arg8[%c0_11, %c0_12] : memref<512x128xf32, #tpu.memory_space<vmem>>, vector<512x128xf32>
      tpu.vector_store %arg8[%c0_11, %c0_12], %12 {strides = array<i32>} : memref<512x128xf32, #tpu.memory_space<vmem>>, vector<512x128xf32>,
    } else {
    }
    %c0 = arith.constant 0 : index
    %c0_1 = arith.constant 0 : index
    %3 = vector.load %arg8[%c0, %c0_1] : memref<512x128xf32, #tpu.memory_space<vmem>>, vector<512x128xf32>
    %c0_2 = arith.constant 0 : index
    %c0_3 = arith.constant 0 : index
    %4 = vector.load %arg4[%c0_2, %c0_3] : memref<512x128xbf16, #tpu.memory_space<vmem>>, vector<512x128xbf16>
    %c0_4 = arith.constant 0 : index
    %c0_5 = arith.constant 0 : index
    %5 = vector.load %arg5[%c0_4, %c0_5] : memref<128x128xbf16, #tpu.memory_space<vmem>>, vector<128x128xbf16>
    %cst = arith.constant dense<0.000000e+00> : vector<512x128xf32>
    %6 = tpu.matmul %4, %5, %cst {dimension_numbers = #tpu.dot_dimension_numbers<[1], [0], [0], [1], [0, 0, 1, 1], [], []>} : vector<512x128xbf16>, vector<128x128xbf16>, vector<512x128xf32> -> vector<512x128xf32>
    %7 = arith.addf %3, %6 : vector<512x128xf32>
    %c0_6 = arith.constant 0 : index
    %c0_7 = arith.constant 0 : index
    %8 = vector.load %arg8[%c0_6, %c0_7] : memref<512x128xf32, #tpu.memory_space<vmem>>, vector<512x128xf32>
    tpu.vector_store %arg8[%c0_6, %c0_7], %7 {strides = array<i32>} : memref<512x128xf32, #tpu.memory_space<vmem>>, vector<512x128xf32>,
    %c0_i32_8 = arith.constant 0 : i32
    %9 = arith.cmpi eq, %arg2, %c0_i32_8 : i32
    %10 = arith.extui %9 : i1 to i32
    %c0_i32_9 = arith.constant 0 : i32
    %11 = arith.cmpi ne, %10, %c0_i32_9 : i32
    scf.if %11 {
      %c0_10 = arith.constant 0 : index
      %c0_11 = arith.constant 0 : index
      %12 = vector.load %arg8[%c0_10, %c0_11] : memref<512x128xf32, #tpu.memory_space<vmem>>, vector<512x128xf32>
      %c0_12 = arith.constant 0 : index
      %13 = memref.load %arg3[%c0_12] : memref<1xf32, #tpu.memory_space<smem>>
      %14 = vector.broadcast %13 : f32 to vector<512x128xf32>
      %15 = arith.mulf %12, %14 : vector<512x128xf32>
      %c0_13 = arith.constant 0 : index
      %c0_14 = arith.constant 0 : index
      %16 = vector.load %arg6[%c0_13, %c0_14] : memref<1x128xf32, #tpu.memory_space<vmem>>, vector<1x128xf32>
      %17 = vector.broadcast %16 : vector<1x128xf32> to vector<512x128xf32>
      %18 = arith.addf %15, %17 : vector<512x128xf32>
      %c0_15 = arith.constant 0 : index
      %c0_16 = arith.constant 0 : index
      %19 = vector.load %arg7[%c0_15, %c0_16] : memref<512x128xf32, #tpu.memory_space<vmem>>, vector<512x128xf32>
      tpu.vector_store %arg7[%c0_15, %c0_16], %18 {strides = array<i32>} : memref<512x128xf32, #tpu.memory_space<vmem>>, vector<512x128xf32>,
    } else {
    }
    return
  }
  func.func @transform_0(%arg0: i32, %arg1: i32, %arg2: i32, %arg3: memref<1xf32, #tpu.memory_space<smem>>) -> (i32, i32) {
    %c0_i32 = arith.constant 0 : i32
    return %arg0, %arg2 : i32, i32
  }
  func.func @transform_1(%arg0: i32, %arg1: i32, %arg2: i32, %arg3: memref<1xf32, #tpu.memory_space<smem>>) -> (i32, i32) {
    %c0_i32 = arith.constant 0 : i32
    return %arg2, %arg1 : i32, i32
  }
  func.func @transform_2(%arg0: i32, %arg1: i32, %arg2: i32, %arg3: memref<1xf32, #tpu.memory_space<smem>>) -> (i32, i32) {
    %c0_i32 = arith.constant 0 : i32
    %c0_i32_0 = arith.constant 0 : i32
    return %c0_i32, %arg1 : i32, i32
  }
  func.func @transform_3(%arg0: i32, %arg1: i32, %arg2: i32, %arg3: memref<1xf32, #tpu.memory_space<smem>>) -> (i32, i32) {
    %c0_i32 = arith.constant 0 : i32
    return %arg0, %arg1 : i32, i32
  }
}

</mosaic_0001>

<bundles_post_ra>
// kernel: tpu_custom_call.1
= control target key start
LH: loop header
LB: loop body
LE: loop exit
PB: predicated region body
PF: predicated region fallthrough
CT: control target
= control target key end

     0   :  { %10 = vsyncpa [#allocation6], 0  ;;  %s1703_s0 = inlined_call_operand.<no memory space> [shape: f32[1], index: 0, kind: input, shape index: {}]   ;;  %s1704_s1 = inlined_call_operand.hbm [shape: bf16[512,128], index: 1, kind: input, shape index: {}]   ;;  %s1705_s2 = inlined_call_operand.hbm [shape: bf16[128,128], index: 2, kind: input, shape index: {}]   ;;  %s1706_s3 = inlined_call_operand.vmem [shape: f32[1,128], index: 3, kind: input, shape index: {}]   ;;  %s1707_s4 = inlined_call_operand.hbm [shape: f32[512,128], index: 4, kind: output, shape index: {}]  }
   0x1   :  { %11 = vsyncpa [#allocation9], 0 }
   0x2   :  { %12 = vsyncpa [#allocation7], 0  ;;  %s1497_s15 = smov [#allocation5]   ;;  %s1425_s19 = scalar_lea.hbm %s1704_s1, 4096 }
   0x3   :  { %s18_s16 = sshll.u32 %s1497_s15, 4  ;;  %p1426_p0 = scmp.ne.s32.totalorder %s1704_s1, %s1425_s19  ;;  %s19_s16 = int_to_ptr.vmem [resolvable:$true] %s18_s16 }
   0x4   :  { %p1429_p1 = scmp.lt.u32.totalorder %s1425_s19, %s1704_s1 }
   0x6   :  { %p1431_p2 = pnand %p1429_p1, %p1426_p0 }
   0x8   :  { %1434 = shalt.err (!%p1431_p2)
}
   0x9   :  { %s1435_s24 = scalar_lea.vmem %s19_s16, 4096  ;;  %p1440_p4 = scmp.lt.s32.totalorder %s19_s16, %s19_s16 }
   0xa   :  { %p1436_p3 = scmp.ne.s32.totalorder %s19_s16, %s1435_s24  ;;  %p1441_p5 = scmp.lt.s32.totalorder %s1435_s24, %s1435_s24 }
   0xc   :  { %p1442_p6 = por %p1441_p5, %p1440_p4 }
   0xe   :  { %p1443_p7 = pnand %p1442_p6, %p1436_p3 }
  0x10   :  { %1446 = shalt.err (!%p1443_p7)
}
  0x11   :  { %s1498_s25 = smov 64   ;;  %s1499_s26 = smov 4  }
  0x12   :  { %24 = dma.hbm_to_vmem [thread:$0]  %s1704_s1, 4096, %s19_s16, [#allocation6], %s1498_s25, %s1498_s25, %s1499_s26  }
  0x13   :  { %s1500_s29 = smov [#allocation8]   ;;  %s1447_s7 = scalar_lea.hbm %s1705_s2, 1024 }
  0x14   :  { %s30_s30 = sshll.u32 %s1500_s29, 4  ;;  %p1448_p8 = scmp.ne.s32.totalorder %s1705_s2, %s1447_s7  ;;  %s31_s30 = int_to_ptr.vmem [resolvable:$true] %s30_s30 }
  0x15   :  { %p1451_p9 = scmp.lt.u32.totalorder %s1447_s7, %s1705_s2 }
  0x17   :  { %p1453_p10 = pnand %p1451_p9, %p1448_p8 }
  0x19   :  { %1456 = shalt.err (!%p1453_p10)
}
  0x1a   :  { %s1457_s12 = scalar_lea.vmem %s31_s30, 1024  ;;  %p1462_p12 = scmp.lt.s32.totalorder %s31_s30, %s31_s30 }
  0x1b   :  { %p1458_p11 = scmp.ne.s32.totalorder %s31_s30, %s1457_s12  ;;  %p1463_p13 = scmp.lt.s32.totalorder %s1457_s12, %s1457_s12 }
  0x1d   :  { %p1464_p0 = por %p1463_p13, %p1462_p12 }
  0x1f   :  { %p1465_p1 = pnand %p1464_p0, %p1458_p11 }
  0x21   :  { %1468 = shalt.err (!%p1465_p1)
}
  0x22   :  { %36 = dma.hbm_to_vmem [thread:$0]  %s1705_s2, 1024, %s31_s30, [#allocation9], %s1498_s25, %s1498_s25, %s1499_s26  }
  0x23   :  { %1491 = dma.done.wait [#allocation6], 4096  }
  0x24   :  { %1492 = vsyncadd [#allocation6], 4294963200 }
  0x25   :  { %1493 = dma.done.wait [#allocation9], 1024  }
  0x26   :  { %1494 = vsyncadd [#allocation9], 4294966272  ;;  %v1385_v0 = vld [vmem:[#allocation8] sm:$0xff]   ;;  %v1386_v1 = vld [vmem:[#allocation8 + $0x8] sm:$0xff]   ;;  %v1556_v40 = vstv %s1703_s0  ;;  %s1501_s0 = smov [#allocation10]  }
  0x27   :  { %1282 = vmatprep.subr.bf16.mxu0 %v1385_v0  ;;  %1362 = vmatprep.subr.bf16.mxu1 %v1385_v0  ;;  %v1387_v2 = vld [vmem:[#allocation8 + $0x10] sm:$0xff]   ;;  %v1388_v3 = vld [vmem:[#allocation8 + $0x18] sm:$0xff]   ;;  %v1393_v4 = vld [vmem:[#allocation5] sm:$0xff]  }
  0x28   :  { %1283 = vmatpush3.bf16.msra.mxu0 %v1385_v0  ;;  %1370 = vmatpush3.bf16.msra.mxu1 %v1385_v0  ;;  %v1394_v5 = vld [vmem:[#allocation5 + $0x80] sm:$0xff]   ;;  %v1390_v7 = vld [vmem:[#allocation8 + $0x28] sm:$0xff]   ;;  %v1391_v8 = vld [vmem:[#allocation8 + $0x30] sm:$0xff]  }
  0x29   :  { %1284 = vmatprep.subr.bf16.mxu0 %v1386_v1  ;;  %1363 = vmatprep.subr.bf16.mxu1 %v1386_v1  ;;  %v1389_v6 = vld [vmem:[#allocation8 + $0x20] sm:$0xff]   ;;  %v1392_v9 = vld [vmem:[#allocation8 + $0x38] sm:$0xff]   ;;  %v1395_v10 = vld [vmem:[#allocation5 + $0x8] sm:$0xff]  }
  0x2a   :  { %1298 = vmatprep.mubr.bf16.mxu0 %v1393_v4  ;;  %1330 = vmatprep.mubr.bf16.mxu1 %v1394_v5  ;;  %v1396_v11 = vld [vmem:[#allocation5 + $0x88] sm:$0xff]   ;;  %v1397_v12 = vld [vmem:[#allocation5 + $0x10] sm:$0xff]   ;;  %v1399_v14 = vld [vmem:[#allocation5 + $0x18] sm:$0xff]  }
  0x2b   :  { %v1398_v13 = vld [vmem:[#allocation5 + $0x90] sm:$0xff]   ;;  %v1400_v15 = vld [vmem:[#allocation5 + $0x98] sm:$0xff]   ;;  %v1401_v16 = vld [vmem:[#allocation5 + $0x20] sm:$0xff]  }
  0x2c   :  { %1285 = vmatpush3.bf16.msra.mxu0 %v1386_v1  ;;  %1371 = vmatpush3.bf16.msra.mxu1 %v1386_v1  ;;  %v1402_v17 = vld [vmem:[#allocation5 + $0xa0] sm:$0xff]   ;;  %v1403_v18 = vld [vmem:[#allocation5 + $0x28] sm:$0xff]   ;;  %v1405_v20 = vld [vmem:[#allocation5 + $0x30] sm:$0xff]  }
  0x2d   :  { %1286 = vmatprep.subr.bf16.mxu0 %v1387_v2  ;;  %1364 = vmatprep.subr.bf16.mxu1 %v1387_v2  ;;  %v1404_v19 = vld [vmem:[#allocation5 + $0xa8] sm:$0xff]   ;;  %v1406_v21 = vld [vmem:[#allocation5 + $0xb0] sm:$0xff]   ;;  %v1407_v22 = vld [vmem:[#allocation5 + $0x38] sm:$0xff]  }
  0x2e   :  { %v1408_v23 = vld [vmem:[#allocation5 + $0xb8] sm:$0xff]   ;;  %v1409_v24 = vld [vmem:[#allocation5 + $0x40] sm:$0xff]   ;;  %v1411_v26 = vld [vmem:[#allocation5 + $0x48] sm:$0xff]  }
  0x2f   :  { %v1410_v25 = vld [vmem:[#allocation5 + $0xc0] sm:$0xff]   ;;  %v1412_v27 = vld [vmem:[#allocation5 + $0xc8] sm:$0xff]   ;;  %v1413_v28 = vld [vmem:[#allocation5 + $0x50] sm:$0xff]  }
  0x30   :  { %1287 = vmatpush3.bf16.msra.mxu0 %v1387_v2  ;;  %1372 = vmatpush3.bf16.msra.mxu1 %v1387_v2  ;;  %v1414_v29 = vld [vmem:[#allocation5 + $0xd0] sm:$0xff]   ;;  %v1415_v30 = vld [vmem:[#allocation5 + $0x58] sm:$0xff]   ;;  %v1417_v32 = vld [vmem:[#allocation5 + $0x60] sm:$0xff]  }
  0x31   :  { %1288 = vmatprep.subr.bf16.mxu0 %v1388_v3  ;;  %1365 = vmatprep.subr.bf16.mxu1 %v1388_v3  ;;  %v1416_v31 = vld [vmem:[#allocation5 + $0xd8] sm:$0xff]   ;;  %v1418_v33 = vld [vmem:[#allocation5 + $0xe0] sm:$0xff]   ;;  %v1419_v34 = vld [vmem:[#allocation5 + $0x68] sm:$0xff]  }
  0x32   :  { %v1420_v35 = vld [vmem:[#allocation5 + $0xe8] sm:$0xff]   ;;  %v1421_v36 = vld [vmem:[#allocation5 + $0x70] sm:$0xff]   ;;  %v1423_v38 = vld [vmem:[#allocation5 + $0x78] sm:$0xff]  }
  0x33   :  { %v1422_v37 = vld [vmem:[#allocation5 + $0xf0] sm:$0xff]   ;;  %v1424_v39 = vld [vmem:[#allocation5 + $0xf8] sm:$0xff]   ;;  %v1561_v42 = vld [vmem:[%s1706_s3] ss:$0 sm:$0xff]  ;;  %s1188_s3 = sshll.u32 %s1501_s0, 4  ;;  %s1189_s3 = int_to_ptr.vmem [resolvable:$true] %s1188_s3 }
  0x34   :  { %1289 = vmatpush3.bf16.msra.mxu0 %v1388_v3  ;;  %1373 = vmatpush3.bf16.msra.mxu1 %v1388_v3  ;;  %s1469_s17 = scalar_lea.vmem %s1189_s3, 8192  ;;  %p1474_p3 = scmp.lt.s32.totalorder %s1189_s3, %s1189_s3 }
  0x35   :  { %1290 = vmatprep.subr.bf16.mxu0 %v1389_v6  ;;  %1366 = vmatprep.subr.bf16.mxu1 %v1389_v6  ;;  %p1470_p2 = scmp.ne.s32.totalorder %s1189_s3, %s1469_s17  ;;  %p1475_p4 = scmp.lt.s32.totalorder %s1469_s17, %s1469_s17 }
  0x37   :  { %p1476_p5 = por %p1475_p4, %p1474_p3 }
  0x38   :  { %1291 = vmatpush3.bf16.msra.mxu0 %v1389_v6  ;;  %1374 = vmatpush3.bf16.msra.mxu1 %v1389_v6 }
  0x39   :  { %1292 = vmatprep.subr.bf16.mxu0 %v1390_v7  ;;  %1367 = vmatprep.subr.bf16.mxu1 %v1390_v7  ;;  %p1477_p6 = pnand %p1476_p5, %p1470_p2 }
  0x3c   :  { %1293 = vmatpush3.bf16.msra.mxu0 %v1390_v7  ;;  %1375 = vmatpush3.bf16.msra.mxu1 %v1390_v7 }
  0x3d   :  { %1294 = vmatprep.subr.bf16.mxu0 %v1391_v8  ;;  %1368 = vmatprep.subr.bf16.mxu1 %v1391_v8 }
  0x40   :  { %1295 = vmatpush3.bf16.msra.mxu0 %v1391_v8  ;;  %1376 = vmatpush3.bf16.msra.mxu1 %v1391_v8 }
  0x41   :  { %1296 = vmatprep.subr.bf16.mxu0 %v1392_v9  ;;  %1369 = vmatprep.subr.bf16.mxu1 %v1392_v9 }
  0x44   :  { %1297 = vmatpush3.bf16.msra.mxu0 %v1392_v9  ;;  %1377 = vmatpush3.bf16.msra.mxu1 %v1392_v9 }
  0x47   :  { %1299 = vmatmul.mubr.bf16.vlgmr.msra.gmra.mrb[0].mxu0 %v1395_v10  ;;  %1331 = vmatmul.mubr.bf16.vlgmr.msra.gmra.mrb[0].mxu1 %v1396_v11 }
  0x48   :  { %1302 = vmatprep.mubr.bf16.mxu0 %v1397_v12  ;;  %1334 = vmatprep.mubr.bf16.mxu1 %v1398_v13 }
  0x4f   :  { %1303 = vmatmul.mubr.bf16.gmra.mrb[4].mxu0 %v1399_v14  ;;  %1335 = vmatmul.mubr.bf16.gmra.mrb[4].mxu1 %v1400_v15 }
  0x50   :  { %1306 = vmatprep.mubr.bf16.mxu0 %v1401_v16  ;;  %1338 = vmatprep.mubr.bf16.mxu1 %v1402_v17 }
  0x57   :  { %1307 = vmatmul.mubr.bf16.gmra.mrb[8].mxu0 %v1403_v18  ;;  %1339 = vmatmul.mubr.bf16.gmra.mrb[8].mxu1 %v1404_v19 }
  0x58   :  { %1310 = vmatprep.mubr.bf16.mxu0 %v1405_v20  ;;  %1342 = vmatprep.mubr.bf16.mxu1 %v1406_v21 }
  0x5f   :  { %1311 = vmatmul.mubr.bf16.gmra.mrb[12].mxu0 %v1407_v22  ;;  %1343 = vmatmul.mubr.bf16.gmra.mrb[12].mxu1 %v1408_v23 }
  0x60   :  { %1314 = vmatprep.mubr.bf16.mxu0 %v1409_v24  ;;  %1346 = vmatprep.mubr.bf16.mxu1 %v1410_v25 }
  0x67   :  { %1315 = vmatmul.mubr.bf16.gmra.mrb[16].mxu0 %v1411_v26  ;;  %1347 = vmatmul.mubr.bf16.gmra.mrb[16].mxu1 %v1412_v27 }
  0x68   :  { %1318 = vmatprep.mubr.bf16.mxu0 %v1413_v28  ;;  %1350 = vmatprep.mubr.bf16.mxu1 %v1414_v29 }
  0x6f   :  { %1319 = vmatmul.mubr.bf16.gmra.mrb[20].mxu0 %v1415_v30  ;;  %1351 = vmatmul.mubr.bf16.gmra.mrb[20].mxu1 %v1416_v31 }
  0x70   :  { %1322 = vmatprep.mubr.bf16.mxu0 %v1417_v32  ;;  %1354 = vmatprep.mubr.bf16.mxu1 %v1418_v33 }
  0x77   :  { %1323 = vmatmul.mubr.bf16.gmra.mrb[24].mxu0 %v1419_v34  ;;  %1355 = vmatmul.mubr.bf16.gmra.mrb[24].mxu1 %v1420_v35 }
  0x78   :  { %1326 = vmatprep.mubr.bf16.mxu0 %v1421_v36  ;;  %1358 = vmatprep.mubr.bf16.mxu1 %v1422_v37 }
  0x7f   :  { %1327 = vmatmul.mubr.bf16.gmra.mrb[28].mxu0 %v1423_v38  ;;  %1359 = vmatmul.mubr.bf16.gmra.mrb[28].mxu1 %v1424_v39 }
 0x11a   :  { %v1300_v41 = vpop.f32.mrb[0].mxu0  ;;  %v1332_v43 = vpop.f32.mrb[0].mxu1 }
 0x11b   :  { %v986_v44 = vmul.f32 %v1300_v41, %v1556_v40  ;;  %v1018_v45 = vmul.f32 %v1332_v43, %v1556_v40  ;;  %v532_v46 = vpop.f32.mrb[1].mxu0  ;;  %v660_v47 = vpop.f32.mrb[1].mxu1 }
 0x11c   :  { %v984_v48 = vmul.f32 %v1556_v40, %v532_v46  ;;  %v1016_v49 = vmul.f32 %v1556_v40, %v660_v47  ;;  %v1301_v50 = vpop.f32.mrb[2].mxu0  ;;  %v1333_v51 = vpop.f32.mrb[2].mxu1 }
 0x11d   :  { %v1057_v52 = vadd.f32 %v1561_v42, %v986_v44  ;;  %v1089_v53 = vadd.f32 %v1561_v42, %v1018_v45  ;;  %v987_v54 = vmul.f32 %v1301_v50, %v1556_v40  ;;  %v1019_v55 = vmul.f32 %v1333_v51, %v1556_v40  ;;  %v535_v56 = vpop.f32.mrb[3].mxu0  ;;  %v663_v57 = vpop.f32.mrb[3].mxu1 }
 0x11e   :  { %v1055_v58 = vadd.f32 %v1561_v42, %v984_v48  ;;  %v1087_v59 = vadd.f32 %v1561_v42, %v1016_v49  ;;  %v985_v60 = vmul.f32 %v1556_v40, %v535_v56  ;;  %v1017_v61 = vmul.f32 %v1556_v40, %v663_v57 }
 0x11f   :  { %1121 = vst [vmem:[#allocation10 + $0x10] sm:$0xff] %v1057_v52  ;;  %1153 = vst [vmem:[#allocation10 + $0x110] sm:$0xff] %v1089_v53  ;;  %v1058_v62 = vadd.f32 %v1561_v42, %v987_v54  ;;  %v1090_v63 = vadd.f32 %v1561_v42, %v1019_v55 }
 0x120   :  { %1119 = vst [vmem:[#allocation10] sm:$0xff] %v1055_v58  ;;  %1151 = vst [vmem:[#allocation10 + $0x100] sm:$0xff] %v1087_v59  ;;  %v1056_v0 = vadd.f32 %v1561_v42, %v985_v60  ;;  %v1088_v1 = vadd.f32 %v1561_v42, %v1017_v61 }
 0x121   :  { %1122 = vst [vmem:[#allocation10 + $0x18] sm:$0xff] %v1058_v62  ;;  %1154 = vst [vmem:[#allocation10 + $0x118] sm:$0xff] %v1090_v63 }
 0x122   :  { %1120 = vst [vmem:[#allocation10 + $0x8] sm:$0xff] %v1056_v0  ;;  %1152 = vst [vmem:[#allocation10 + $0x108] sm:$0xff] %v1088_v1  ;;  %v1304_v2 = vpop.f32.mrb[4].mxu0  ;;  %v1336_v3 = vpop.f32.mrb[4].mxu1 }
 0x123   :  { %v990_v4 = vmul.f32 %v1304_v2, %v1556_v40  ;;  %v1022_v5 = vmul.f32 %v1336_v3, %v1556_v40  ;;  %v548_v6 = vpop.f32.mrb[5].mxu0  ;;  %v676_v7 = vpop.f32.mrb[5].mxu1 }
 0x124   :  { %v988_v8 = vmul.f32 %v1556_v40, %v548_v6  ;;  %v1020_v9 = vmul.f32 %v1556_v40, %v676_v7  ;;  %v1305_v10 = vpop.f32.mrb[6].mxu0  ;;  %v1337_v11 = vpop.f32.mrb[6].mxu1 }
 0x125   :  { %v1061_v12 = vadd.f32 %v1561_v42, %v990_v4  ;;  %v1093_v13 = vadd.f32 %v1561_v42, %v1022_v5  ;;  %v991_v14 = vmul.f32 %v1305_v10, %v1556_v40  ;;  %v1023_v15 = vmul.f32 %v1337_v11, %v1556_v40  ;;  %v551_v16 = vpop.f32.mrb[7].mxu0  ;;  %v679_v17 = vpop.f32.mrb[7].mxu1 }
 0x126   :  { %v1059_v18 = vadd.f32 %v1561_v42, %v988_v8  ;;  %v1091_v19 = vadd.f32 %v1561_v42, %v1020_v9  ;;  %v989_v20 = vmul.f32 %v1556_v40, %v551_v16  ;;  %v1021_v21 = vmul.f32 %v1556_v40, %v679_v17 }
 0x127   :  { %1125 = vst [vmem:[#allocation10 + $0x30] sm:$0xff] %v1061_v12  ;;  %1157 = vst [vmem:[#allocation10 + $0x130] sm:$0xff] %v1093_v13  ;;  %v1062_v22 = vadd.f32 %v1561_v42, %v991_v14  ;;  %v1094_v23 = vadd.f32 %v1561_v42, %v1023_v15 }
 0x128   :  { %1123 = vst [vmem:[#allocation10 + $0x20] sm:$0xff] %v1059_v18  ;;  %1155 = vst [vmem:[#allocation10 + $0x120] sm:$0xff] %v1091_v19  ;;  %v1060_v24 = vadd.f32 %v1561_v42, %v989_v20  ;;  %v1092_v25 = vadd.f32 %v1561_v42, %v1021_v21 }
 0x129   :  { %1126 = vst [vmem:[#allocation10 + $0x38] sm:$0xff] %v1062_v22  ;;  %1158 = vst [vmem:[#allocation10 + $0x138] sm:$0xff] %v1094_v23 }
 0x12a   :  { %1124 = vst [vmem:[#allocation10 + $0x28] sm:$0xff] %v1060_v24  ;;  %1156 = vst [vmem:[#allocation10 + $0x128] sm:$0xff] %v1092_v25  ;;  %v1308_v26 = vpop.f32.mrb[8].mxu0  ;;  %v1340_v27 = vpop.f32.mrb[8].mxu1 }
 0x12b   :  { %v994_v28 = vmul.f32 %v1308_v26, %v1556_v40  ;;  %v1026_v29 = vmul.f32 %v1340_v27, %v1556_v40  ;;  %v564_v30 = vpop.f32.mrb[9].mxu0  ;;  %v692_v31 = vpop.f32.mrb[9].mxu1 }
 0x12c   :  { %v992_v32 = vmul.f32 %v1556_v40, %v564_v30  ;;  %v1024_v33 = vmul.f32 %v1556_v40, %v692_v31  ;;  %v1309_v34 = vpop.f32.mrb[10].mxu0  ;;  %v1341_v35 = vpop.f32.mrb[10].mxu1 }
 0x12d   :  { %v1065_v36 = vadd.f32 %v1561_v42, %v994_v28  ;;  %v1097_v37 = vadd.f32 %v1561_v42, %v1026_v29  ;;  %v995_v38 = vmul.f32 %v1309_v34, %v1556_v40  ;;  %v1027_v39 = vmul.f32 %v1341_v35, %v1556_v40  ;;  %v567_v41 = vpop.f32.mrb[11].mxu0  ;;  %v695_v43 = vpop.f32.mrb[11].mxu1 }
 0x12e   :  { %v1063_v44 = vadd.f32 %v1561_v42, %v992_v32  ;;  %v1095_v45 = vadd.f32 %v1561_v42, %v1024_v33  ;;  %v993_v46 = vmul.f32 %v1556_v40, %v567_v41  ;;  %v1025_v47 = vmul.f32 %v1556_v40, %v695_v43 }
 0x12f   :  { %1129 = vst [vmem:[#allocation10 + $0x50] sm:$0xff] %v1065_v36  ;;  %1161 = vst [vmem:[#allocation10 + $0x150] sm:$0xff] %v1097_v37  ;;  %v1066_v48 = vadd.f32 %v1561_v42, %v995_v38  ;;  %v1098_v49 = vadd.f32 %v1561_v42, %v1027_v39 }
 0x130   :  { %1127 = vst [vmem:[#allocation10 + $0x40] sm:$0xff] %v1063_v44  ;;  %1159 = vst [vmem:[#allocation10 + $0x140] sm:$0xff] %v1095_v45  ;;  %v1064_v50 = vadd.f32 %v1561_v42, %v993_v46  ;;  %v1096_v51 = vadd.f32 %v1561_v42, %v1025_v47 }
 0x131   :  { %1130 = vst [vmem:[#allocation10 + $0x58] sm:$0xff] %v1066_v48  ;;  %1162 = vst [vmem:[#allocation10 + $0x158] sm:$0xff] %v1098_v49 }
 0x132   :  { %1128 = vst [vmem:[#allocation10 + $0x48] sm:$0xff] %v1064_v50  ;;  %1160 = vst [vmem:[#allocation10 + $0x148] sm:$0xff] %v1096_v51  ;;  %v1312_v52 = vpop.f32.mrb[12].mxu0  ;;  %v1344_v53 = vpop.f32.mrb[12].mxu1 }
 0x133   :  { %v998_v54 = vmul.f32 %v1312_v52, %v1556_v40  ;;  %v1030_v55 = vmul.f32 %v1344_v53, %v1556_v40  ;;  %v580_v56 = vpop.f32.mrb[13].mxu0  ;;  %v708_v57 = vpop.f32.mrb[13].mxu1 }
 0x134   :  { %v996_v58 = vmul.f32 %v1556_v40, %v580_v56  ;;  %v1028_v59 = vmul.f32 %v1556_v40, %v708_v57  ;;  %v1313_v60 = vpop.f32.mrb[14].mxu0  ;;  %v1345_v61 = vpop.f32.mrb[14].mxu1 }
 0x135   :  { %v1069_v62 = vadd.f32 %v1561_v42, %v998_v54  ;;  %v1101_v63 = vadd.f32 %v1561_v42, %v1030_v55  ;;  %v999_v0 = vmul.f32 %v1313_v60, %v1556_v40  ;;  %v1031_v1 = vmul.f32 %v1345_v61, %v1556_v40  ;;  %v583_v2 = vpop.f32.mrb[15].mxu0  ;;  %v711_v3 = vpop.f32.mrb[15].mxu1 }
 0x136   :  { %v1067_v4 = vadd.f32 %v1561_v42, %v996_v58  ;;  %v1099_v5 = vadd.f32 %v1561_v42, %v1028_v59  ;;  %v997_v6 = vmul.f32 %v1556_v40, %v583_v2  ;;  %v1029_v7 = vmul.f32 %v1556_v40, %v711_v3 }
 0x137   :  { %1133 = vst [vmem:[#allocation10 + $0x70] sm:$0xff] %v1069_v62  ;;  %1165 = vst [vmem:[#allocation10 + $0x170] sm:$0xff] %v1101_v63  ;;  %v1070_v8 = vadd.f32 %v1561_v42, %v999_v0  ;;  %v1102_v9 = vadd.f32 %v1561_v42, %v1031_v1 }
 0x138   :  { %1131 = vst [vmem:[#allocation10 + $0x60] sm:$0xff] %v1067_v4  ;;  %1163 = vst [vmem:[#allocation10 + $0x160] sm:$0xff] %v1099_v5  ;;  %v1068_v10 = vadd.f32 %v1561_v42, %v997_v6  ;;  %v1100_v11 = vadd.f32 %v1561_v42, %v1029_v7 }
 0x139   :  { %1134 = vst [vmem:[#allocation10 + $0x78] sm:$0xff] %v1070_v8  ;;  %1166 = vst [vmem:[#allocation10 + $0x178] sm:$0xff] %v1102_v9 }
 0x13a   :  { %1132 = vst [vmem:[#allocation10 + $0x68] sm:$0xff] %v1068_v10  ;;  %1164 = vst [vmem:[#allocation10 + $0x168] sm:$0xff] %v1100_v11  ;;  %v1316_v12 = vpop.f32.mrb[16].mxu0  ;;  %v1348_v13 = vpop.f32.mrb[16].mxu1 }
 0x13b   :  { %v1002_v14 = vmul.f32 %v1316_v12, %v1556_v40  ;;  %v1034_v15 = vmul.f32 %v1348_v13, %v1556_v40  ;;  %v596_v16 = vpop.f32.mrb[17].mxu0  ;;  %v724_v17 = vpop.f32.mrb[17].mxu1 }
 0x13c   :  { %v1000_v18 = vmul.f32 %v1556_v40, %v596_v16  ;;  %v1032_v19 = vmul.f32 %v1556_v40, %v724_v17  ;;  %v1317_v20 = vpop.f32.mrb[18].mxu0  ;;  %v1349_v21 = vpop.f32.mrb[18].mxu1 }
 0x13d   :  { %v1073_v22 = vadd.f32 %v1561_v42, %v1002_v14  ;;  %v1105_v23 = vadd.f32 %v1561_v42, %v1034_v15  ;;  %v1003_v24 = vmul.f32 %v1317_v20, %v1556_v40  ;;  %v1035_v25 = vmul.f32 %v1349_v21, %v1556_v40  ;;  %v599_v26 = vpop.f32.mrb[19].mxu0  ;;  %v727_v27 = vpop.f32.mrb[19].mxu1 }
 0x13e   :  { %v1071_v28 = vadd.f32 %v1561_v42, %v1000_v18  ;;  %v1103_v29 = vadd.f32 %v1561_v42, %v1032_v19  ;;  %v1001_v30 = vmul.f32 %v1556_v40, %v599_v26  ;;  %v1033_v31 = vmul.f32 %v1556_v40, %v727_v27 }
 0x13f   :  { %1137 = vst [vmem:[#allocation10 + $0x90] sm:$0xff] %v1073_v22  ;;  %1169 = vst [vmem:[#allocation10 + $0x190] sm:$0xff] %v1105_v23  ;;  %v1074_v32 = vadd.f32 %v1561_v42, %v1003_v24  ;;  %v1106_v33 = vadd.f32 %v1561_v42, %v1035_v25 }
 0x140   :  { %1135 = vst [vmem:[#allocation10 + $0x80] sm:$0xff] %v1071_v28  ;;  %1167 = vst [vmem:[#allocation10 + $0x180] sm:$0xff] %v1103_v29  ;;  %v1072_v34 = vadd.f32 %v1561_v42, %v1001_v30  ;;  %v1104_v35 = vadd.f32 %v1561_v42, %v1033_v31 }
 0x141   :  { %1138 = vst [vmem:[#allocation10 + $0x98] sm:$0xff] %v1074_v32  ;;  %1170 = vst [vmem:[#allocation10 + $0x198] sm:$0xff] %v1106_v33 }
 0x142   :  { %1136 = vst [vmem:[#allocation10 + $0x88] sm:$0xff] %v1072_v34  ;;  %1168 = vst [vmem:[#allocation10 + $0x188] sm:$0xff] %v1104_v35  ;;  %v1320_v36 = vpop.f32.mrb[20].mxu0  ;;  %v1352_v37 = vpop.f32.mrb[20].mxu1 }
 0x143   :  { %v1006_v38 = vmul.f32 %v1320_v36, %v1556_v40  ;;  %v1038_v39 = vmul.f32 %v1352_v37, %v1556_v40  ;;  %v612_v41 = vpop.f32.mrb[21].mxu0  ;;  %v740_v43 = vpop.f32.mrb[21].mxu1 }
 0x144   :  { %v1004_v44 = vmul.f32 %v1556_v40, %v612_v41  ;;  %v1036_v45 = vmul.f32 %v1556_v40, %v740_v43  ;;  %v1321_v46 = vpop.f32.mrb[22].mxu0  ;;  %v1353_v47 = vpop.f32.mrb[22].mxu1 }
 0x145   :  { %v1077_v48 = vadd.f32 %v1561_v42, %v1006_v38  ;;  %v1109_v49 = vadd.f32 %v1561_v42, %v1038_v39  ;;  %v1007_v50 = vmul.f32 %v1321_v46, %v1556_v40  ;;  %v1039_v51 = vmul.f32 %v1353_v47, %v1556_v40  ;;  %v615_v52 = vpop.f32.mrb[23].mxu0  ;;  %v743_v53 = vpop.f32.mrb[23].mxu1 }
 0x146   :  { %v1075_v54 = vadd.f32 %v1561_v42, %v1004_v44  ;;  %v1107_v55 = vadd.f32 %v1561_v42, %v1036_v45  ;;  %v1005_v56 = vmul.f32 %v1556_v40, %v615_v52  ;;  %v1037_v57 = vmul.f32 %v1556_v40, %v743_v53 }
 0x147   :  { %1141 = vst [vmem:[#allocation10 + $0xb0] sm:$0xff] %v1077_v48  ;;  %1173 = vst [vmem:[#allocation10 + $0x1b0] sm:$0xff] %v1109_v49  ;;  %v1078_v58 = vadd.f32 %v1561_v42, %v1007_v50  ;;  %v1110_v59 = vadd.f32 %v1561_v42, %v1039_v51 }
 0x148   :  { %1139 = vst [vmem:[#allocation10 + $0xa0] sm:$0xff] %v1075_v54  ;;  %1171 = vst [vmem:[#allocation10 + $0x1a0] sm:$0xff] %v1107_v55  ;;  %v1076_v60 = vadd.f32 %v1561_v42, %v1005_v56  ;;  %v1108_v61 = vadd.f32 %v1561_v42, %v1037_v57 }
 0x149   :  { %1142 = vst [vmem:[#allocation10 + $0xb8] sm:$0xff] %v1078_v58  ;;  %1174 = vst [vmem:[#allocation10 + $0x1b8] sm:$0xff] %v1110_v59 }
 0x14a   :  { %1140 = vst [vmem:[#allocation10 + $0xa8] sm:$0xff] %v1076_v60  ;;  %1172 = vst [vmem:[#allocation10 + $0x1a8] sm:$0xff] %v1108_v61  ;;  %v1324_v62 = vpop.f32.mrb[24].mxu0  ;;  %v1356_v63 = vpop.f32.mrb[24].mxu1 }
 0x14b   :  { %v1010_v0 = vmul.f32 %v1324_v62, %v1556_v40  ;;  %v1042_v1 = vmul.f32 %v1356_v63, %v1556_v40  ;;  %v628_v2 = vpop.f32.mrb[25].mxu0  ;;  %v756_v3 = vpop.f32.mrb[25].mxu1 }
 0x14c   :  { %v1008_v4 = vmul.f32 %v1556_v40, %v628_v2  ;;  %v1040_v5 = vmul.f32 %v1556_v40, %v756_v3  ;;  %v1325_v6 = vpop.f32.mrb[26].mxu0  ;;  %v1357_v7 = vpop.f32.mrb[26].mxu1 }
 0x14d   :  { %v1081_v8 = vadd.f32 %v1561_v42, %v1010_v0  ;;  %v1113_v9 = vadd.f32 %v1561_v42, %v1042_v1  ;;  %v1011_v10 = vmul.f32 %v1325_v6, %v1556_v40  ;;  %v1043_v11 = vmul.f32 %v1357_v7, %v1556_v40  ;;  %v631_v12 = vpop.f32.mrb[27].mxu0  ;;  %v759_v13 = vpop.f32.mrb[27].mxu1 }
 0x14e   :  { %v1079_v14 = vadd.f32 %v1561_v42, %v1008_v4  ;;  %v1111_v15 = vadd.f32 %v1561_v42, %v1040_v5  ;;  %v1009_v16 = vmul.f32 %v1556_v40, %v631_v12  ;;  %v1041_v17 = vmul.f32 %v1556_v40, %v759_v13 }
 0x14f   :  { %1145 = vst [vmem:[#allocation10 + $0xd0] sm:$0xff] %v1081_v8  ;;  %1177 = vst [vmem:[#allocation10 + $0x1d0] sm:$0xff] %v1113_v9  ;;  %v1082_v18 = vadd.f32 %v1561_v42, %v1011_v10  ;;  %v1114_v19 = vadd.f32 %v1561_v42, %v1043_v11 }
 0x150   :  { %1143 = vst [vmem:[#allocation10 + $0xc0] sm:$0xff] %v1079_v14  ;;  %1175 = vst [vmem:[#allocation10 + $0x1c0] sm:$0xff] %v1111_v15  ;;  %v1080_v20 = vadd.f32 %v1561_v42, %v1009_v16  ;;  %v1112_v21 = vadd.f32 %v1561_v42, %v1041_v17 }
 0x151   :  { %1146 = vst [vmem:[#allocation10 + $0xd8] sm:$0xff] %v1082_v18  ;;  %1178 = vst [vmem:[#allocation10 + $0x1d8] sm:$0xff] %v1114_v19 }
 0x152   :  { %1144 = vst [vmem:[#allocation10 + $0xc8] sm:$0xff] %v1080_v20  ;;  %1176 = vst [vmem:[#allocation10 + $0x1c8] sm:$0xff] %v1112_v21  ;;  %v1328_v22 = vpop.f32.mrb[28].mxu0  ;;  %v1360_v23 = vpop.f32.mrb[28].mxu1 }
 0x153   :  { %v1014_v24 = vmul.f32 %v1328_v22, %v1556_v40  ;;  %v1046_v25 = vmul.f32 %v1360_v23, %v1556_v40  ;;  %v644_v26 = vpop.f32.mrb[29].mxu0  ;;  %v772_v27 = vpop.f32.mrb[29].mxu1 }
 0x154   :  { %v1012_v28 = vmul.f32 %v1556_v40, %v644_v26  ;;  %v1044_v29 = vmul.f32 %v1556_v40, %v772_v27  ;;  %v1329_v30 = vpop.f32.mrb[30].mxu0  ;;  %v1361_v31 = vpop.f32.mrb[30].mxu1 }
 0x155   :  { %v1085_v32 = vadd.f32 %v1561_v42, %v1014_v24  ;;  %v1117_v33 = vadd.f32 %v1561_v42, %v1046_v25  ;;  %v1015_v34 = vmul.f32 %v1329_v30, %v1556_v40  ;;  %v1047_v35 = vmul.f32 %v1361_v31, %v1556_v40  ;;  %v647_v36 = vpop.f32.mrb[31].mxu0  ;;  %v775_v37 = vpop.f32.mrb[31].mxu1 }
 0x156   :  { %v1083_v38 = vadd.f32 %v1561_v42, %v1012_v28  ;;  %v1115_v39 = vadd.f32 %v1561_v42, %v1044_v29  ;;  %v1013_v41 = vmul.f32 %v1556_v40, %v647_v36  ;;  %v1045_v43 = vmul.f32 %v1556_v40, %v775_v37 }
 0x157   :  { %1149 = vst [vmem:[#allocation10 + $0xf0] sm:$0xff] %v1085_v32  ;;  %1181 = vst [vmem:[#allocation10 + $0x1f0] sm:$0xff] %v1117_v33  ;;  %v1086_v44 = vadd.f32 %v1561_v42, %v1015_v34  ;;  %v1118_v45 = vadd.f32 %v1561_v42, %v1047_v35 }
 0x158   :  { %1147 = vst [vmem:[#allocation10 + $0xe0] sm:$0xff] %v1083_v38  ;;  %1179 = vst [vmem:[#allocation10 + $0x1e0] sm:$0xff] %v1115_v39  ;;  %v1084_v46 = vadd.f32 %v1561_v42, %v1013_v41  ;;  %v1116_v47 = vadd.f32 %v1561_v42, %v1045_v43 }
 0x159   :  { %1150 = vst [vmem:[#allocation10 + $0xf8] sm:$0xff] %v1086_v44  ;;  %1182 = vst [vmem:[#allocation10 + $0x1f8] sm:$0xff] %v1118_v45 }
 0x15a   :  { %1148 = vst [vmem:[#allocation10 + $0xe8] sm:$0xff] %v1084_v46  ;;  %1180 = vst [vmem:[#allocation10 + $0x1e8] sm:$0xff] %v1116_v47 }
 0x15b   :  { %1480 = shalt.err (!%p1477_p6)
}
 0x15c   :  { %s1481_s20 = scalar_lea.hbm %s1707_s4, 8192 }
 0x15d   :  { %p1482_p7 = scmp.ne.s32.totalorder %s1707_s4, %s1481_s20  ;;  %p1485_p8 = scmp.lt.u32.totalorder %s1481_s20, %s1707_s4 }
 0x15f   :  { %p1487_p9 = pnand %p1485_p8, %p1482_p7 }
 0x161   :  { %1490 = shalt.err (!%p1487_p9)
}
 0x162   :  { %s1502_s25 = smov 128   ;;  %s1503_s26 = smov 8  }
 0x163   :  { %1194 = dma.vmem_to_hbm [thread:$0]  %s1189_s3, 8192, %s1707_s4, [#allocation7], %s1502_s25, %s1502_s25, %s1503_s26  }
 0x164   :  { %1495 = dma.done.wait [#allocation7], 8192  }
 0x165   :  { %1496 = vsyncadd [#allocation7], 4294959104 }
 0x166   :  { %1198 = vsyncpa [#allocation6], 1 }
 0x167   :  { %1199 = vsyncpa [#allocation9], 1 }
 0x168   :  { %1200 = vsyncpa [#allocation7], 1 }

</bundles_post_ra>
